<compile_context>
chip_gen: v5e
topology: v5e:2x2
jax: 0.10.0
libtpu: 0.0.40
codegen_flags: <defaults>
</compile_context>

<pallas_src>
import math
from functools import partial

import jax
import jax.numpy as jnp
from jax import lax
from jax.experimental import pallas as pl
from jax.experimental.pallas import tpu as pltpu
from jax.scipy.linalg import cho_solve
from jax.scipy.special import gammaln

# ---- module config: SparseGPNoise(t0=0.0, t1=1.0, dt=0.01, dim=1, num_steps=100, num_inducings=10)
T0, T1, DT = 0.0, 1.0, 0.01
DIM = 1
NUM_STEPS = 100
NUM_INDUCING = 10
DS = (T1 - T0) / NUM_STEPS
SQRT_DT = math.sqrt(DT)
SCALE = math.sqrt(DS) / DT          # folded sqrt(ds)/dt constant (Eq. 8)
EPS_W = 1e-12                       # matches reference eps inside the sqrt

S_PAD = 128                         # quadrature axis padded to a full vreg lane width
OUT_W = 128                         # lane-dense output slab width (unmasked vst)

assert NUM_STEPS + NUM_INDUCING <= S_PAD   # alpha must fit in the zero pad lanes of k_ts


def _round_up(n, m):
    return ((n + m - 1) // m) * m


# ------------------------------ kernel math ---------------------------------
def _weight_body(tau, two_h, coef, s0, s1):
    """g_i(t) of Eq. 5 (Muniandy weight) with 1/(Gamma(h+.5)*sqrt(2h*ds)) pre-folded into `coef`.
    tau/two_h/coef are (T,1); s0/s1 are (1,S_PAD).  Result is >= 0 (no clamp needed)."""
    d0 = jnp.maximum(tau - s0, 0.0)          # relu(t - steps[:-1])
    d1 = jnp.maximum(tau - s1, 0.0)          # relu(t - steps[1:])
    # x ** (2h) with torch semantics at x == 0 (0 ** p = 0 for p > 0)
    p0 = jnp.where(d0 > 0.0, jnp.exp(two_h * jnp.log(jnp.maximum(d0, 1e-30))), 0.0)
    p1 = jnp.where(d1 > 0.0, jnp.exp(two_h * jnp.log(jnp.maximum(d1, 1e-30))), 0.0)
    return jnp.sqrt(p0 - p1 + EPS_W) * coef


def _increment_body(f, sr, lane_mask):
    """(g_i(t+dt) - g_i(t)) * sqrt(ds) / dt, clamped at 0 (Eq. 8). Output (T, S_PAD) with the
    padded lanes (>= NUM_STEPS) forced to exact zero so they never leak into the MXU passes."""
    tau, two_ha, ca = f[:, 0:1], f[:, 1:2], f[:, 2:3]
    two_hb, cb = f[:, 3:4], f[:, 4:5]
    s0, s1 = sr[0:1], sr[1:2]
    wa = _weight_body(tau, two_ha, ca, s0, s1)
    wb = _weight_body(tau + DT, two_hb, cb, s0, s1)
    k = jnp.maximum((wb - wa) * SCALE, 0.0)
    return jnp.where(lane_mask, k, 0.0)


def _lane_mask():
    return lax.broadcasted_iota(jnp.int32, (1, S_PAD), 1) < NUM_STEPS


# ------------------------------ Pallas kernels -------------------------------
_CONTRACT_LAST = (((1,), (1,)), ((), ()))   # contract last axis of both operands


def _increment_weight_kernel(feats_ref, steps_ref, out_ref):
    # feats: (N, 5) cols = [tau, 2*h(t), c(t), 2*h(t+dt), c(t+dt)]; steps: (2, S_PAD)
    out_ref[...] = _increment_body(feats_ref[...], steps_ref[...], _lane_mask())


def _forward_kernel(feats_ref, steps_ref, wpad_ref, v_ref, mean_ref, std_ref, d_sc):
    tp = feats_ref.shape[0]                                           # static
    k_ts = _increment_body(feats_ref[...], steps_ref[...], _lane_mask())     # (tp, S_PAD)

    # alpha^T = Ktz Kzz^{-1}, pre-placed in lanes [NUM_STEPS, NUM_STEPS+M) via W_pad.
    alpha_pad = jnp.dot(k_ts, wpad_ref[...], preferred_element_type=jnp.float32)   # (tp, S_PAD)

    # mean = alpha^T delta_Bz = k_ts @ (Kz^T Kzz^{-1} delta_Bz); lanes [0,B) of 128-wide slab.
    mean_ref[...] = jnp.dot(k_ts, v_ref[...], preferred_element_type=jnp.float32)  # (tp, OUT_W)

    # var = Ktt - alpha^T alpha in ONE K=S_PAD MXU pass:
    #   (k + a) . (k - a)^T : cross terms vanish because k_ts (lanes < NUM_STEPS) and
    #   alpha_pad (lanes >= NUM_STEPS) occupy disjoint lane ranges.
    # Zero-pad the rhs rows to OUT_W so the std store is a full-width (lane-dense) vst.
    if tp < OUT_W:
        d_sc[pl.ds(tp, OUT_W - tp), :] = jnp.zeros((OUT_W - tp, S_PAD), jnp.float32)
    d_sc[pl.ds(0, tp), :] = k_ts - alpha_pad
    var_pad = lax.dot_general(k_ts + alpha_pad, d_sc[...],
                              dimension_numbers=_CONTRACT_LAST,
                              preferred_element_type=jnp.float32)     # (tp, OUT_W)
    std_ref[...] = jnp.sqrt(jnp.maximum(var_pad, 0.0)) * SQRT_DT


def _full_spec(shape):
    return pl.BlockSpec(shape, lambda i: (0,) * len(shape))


_PARAMS = pltpu.CompilerParams(dimension_semantics=("arbitrary",))


# ------------------------------ Hurst head -----------------------------------
def init_hurst_params(key):
    # HurstCDE(input_channels=2, hidden_channels=8, output_channels=1)-shaped head.
    k1, k2, k3, k4 = jax.random.split(key, 4)
    w1 = 0.5 * jax.random.normal(k1, (2, 8), jnp.float32)
    b1 = 0.1 * jax.random.normal(k2, (8,), jnp.float32)
    w2 = 0.5 * jax.random.normal(k3, (8, 1), jnp.float32)
    b2 = 0.1 * jax.random.normal(k4, (1,), jnp.float32)
    return (w1, b1, w2, b2)


def compute_hurst(t, params):
    # TODO(synk): reference uses HurstCDE (a torchcde neural CDE on hermite-spline coefficients
    # of the drift); its definition is not provided, so a deterministic 2->8->1 MLP + sigmoid
    # stands in for sigmoid(HurstCDE(coeffs)).
    w1, b1, w2, b2 = params
    feats = jnp.stack([t, jnp.ones_like(t)], axis=-1)   # (N, 2)
    hdn = jnp.tanh(feats @ w1 + b1)                     # (N, 8)
    out = hdn @ w2 + b2                                 # (N, 1)
    return jax.nn.sigmoid(out[:, 0])                    # (N,)


def _build_feats(tau, hurst_params):
    """(N, 5) columns [tau, 2*h(t), c(t), 2*h(t+dt), c(t+dt)], c = 1/(Gamma(h+.5)*sqrt(2h*ds));
    single batched Hurst evaluation for t and t+dt."""
    n = tau.shape[0]
    tt = jnp.concatenate([tau, tau + DT])
    h = compute_hurst(tt, hurst_params)                  # (2N,)
    two_h = 2.0 * h
    coef = jnp.exp(-gammaln(h + 0.5)) * lax.rsqrt(two_h * DS)
    feats = jnp.stack([tau, two_h[:n], coef[:n], two_h[n:], coef[n:]], axis=1)
    return feats.astype(jnp.float32)                     # (N, 5)


# ------------------------------ fused forward (jitted) -----------------------
@partial(jax.jit, static_argnames=("batch",))
def _forward_impl(t, hurst_params, steps_r, w_pad, v_slab, *, batch):
    n = t.shape[0]
    tp = max(8, _round_up(n, 8))
    t_pad = jnp.pad(t, (0, tp - n), mode="edge")
    feats = _build_feats(t_pad, hurst_params)            # (tp, 5)

    # advisory cost: ~22 VPU flop + ~10 transcendentals per (tp, S_PAD) element + 3 dense matmuls
    cost = pl.CostEstimate(
        flops=22 * tp * S_PAD + 6 * tp * S_PAD * OUT_W,
        transcendentals=10 * tp * S_PAD,
        bytes_accessed=4 * (tp * 5 + 2 * S_PAD + S_PAD * S_PAD + S_PAD * OUT_W + 2 * tp * OUT_W),
    )

    mean_slab, std_slab = pl.pallas_call(
        _forward_kernel,
        grid=(1,),
        in_specs=[_full_spec((tp, 5)), _full_spec((2, S_PAD)),
                  _full_spec((S_PAD, S_PAD)), _full_spec((S_PAD, OUT_W))],
        out_specs=(_full_spec((tp, OUT_W)), _full_spec((tp, OUT_W))),
        out_shape=(jax.ShapeDtypeStruct((tp, OUT_W), jnp.float32),
                   jax.ShapeDtypeStruct((tp, OUT_W), jnp.float32)),
        scratch_shapes=[pltpu.VMEM((OUT_W, S_PAD), jnp.float32)],
        compiler_params=_PARAMS,
        cost_estimate=cost,
    )(feats, steps_r, w_pad, v_slab)

    mean = mean_slab[:n, :batch]                         # (T, B)
    std = std_slab[:n, :n]                               # (T, T)
    return mean.reshape(-1, DIM), std.reshape(-1, DIM)


# ------------------------------ module ---------------------------------------
class SparseGPNoisePallas:
    def __init__(self, key):
        steps = jnp.linspace(T0, T1, NUM_STEPS + 1, dtype=jnp.float32)
        self.steps = steps
        # pad quadrature lanes to 128 with sentinels (tau - s <= 0 there); masked to zero in-kernel
        pad = S_PAD - NUM_STEPS
        sentinel = jnp.full((pad,), T1 + 1.0, jnp.float32)
        self.steps_r = jnp.stack([jnp.concatenate([steps[:-1], sentinel]),
                                  jnp.concatenate([steps[1:], sentinel])], axis=0)   # (2, S_PAD)
        self.Z = jnp.linspace(T0 + DT * 5.5, T1 - DT * 5.5, NUM_INDUCING, dtype=jnp.float32)
        self.hurst_params = init_hurst_params(key)
        self.Lz = None            # (M, M) cholesky(Kzz + 1e-6 I)
        self.delta_Bz = None      # (M, B)
        self.W_pad = None         # (S_PAD, S_PAD): Kz^T Kzz^{-1} placed in cols [NUM_STEPS, NUM_STEPS+M)
        self.V_slab = None        # (S_PAD, OUT_W): Kz^T Kzz^{-1} delta_Bz placed in cols [0, B)
        self.batch_size = None

    def increment_weight(self, tau):
        """Pallas kernel: Eq. 8 increment weights, shape (len(tau), NUM_STEPS)."""
        n = tau.shape[0]
        npad = max(8, _round_up(n, 8))
        tau_p = jnp.pad(tau, (0, npad - n), mode="edge")
        feats = _build_feats(tau_p, self.hurst_params)
        kt = pl.pallas_call(
            _increment_weight_kernel,
            grid=(1,),
            in_specs=[_full_spec((npad, 5)), _full_spec((2, S_PAD))],
            out_specs=_full_spec((npad, S_PAD)),
            out_shape=jax.ShapeDtypeStruct((npad, S_PAD), jnp.float32),
            compiler_params=_PARAMS,
        )(feats, self.steps_r)
        return kt[:n, :NUM_STEPS]

    def precompute(self, key, batch_size=1):
        m = NUM_INDUCING
        kz = self.increment_weight(self.Z)                       # (M, NUM_STEPS)
        kzz = kz @ kz.T                                          # sum_s Kz[s] (x) Kz[s]
        kzz_reg = kzz + 1e-6 * jnp.eye(m, dtype=jnp.float32)
        self.Lz = jnp.linalg.cholesky(kzz_reg)
        # (Kzz + 1e-6 I)^{-1} once (replaces per-call cholesky_solve with a baked-in matmul)
        kzz_inv = cho_solve((self.Lz, True), jnp.eye(m, dtype=jnp.float32))
        eps = jax.random.normal(key, (m, batch_size), dtype=jnp.float32)
        self.delta_Bz = self.Lz @ eps                            # (M, B)

        w = kz.T @ kzz_inv                                       # (NUM_STEPS, M)
        # alpha lands in the zero pad lanes [NUM_STEPS, NUM_STEPS+M) of k_ts after one K=128 pass
        self.W_pad = (jnp.zeros((S_PAD, S_PAD), jnp.float32)
                      .at[:NUM_STEPS, NUM_STEPS:NUM_STEPS + m].set(w))
        # mean projector, placed in lanes [0, B) of a full 128-wide (lane-dense) output slab
        v = w @ self.delta_Bz                                    # (NUM_STEPS, B)
        self.V_slab = (jnp.zeros((S_PAD, OUT_W), jnp.float32)
                       .at[:NUM_STEPS, :batch_size].set(v))
        self.batch_size = batch_size

    def forward(self, t):
        n = t.shape[0]
        assert max(8, _round_up(n, 8)) <= OUT_W and self.batch_size <= OUT_W, \
            "single-block kernel supports T, B <= 128"
        # TODO(synk): for T > 128, tile the (T, T) std output over an (i, j) grid
        # (parallel dimension_semantics for the 2 TensorCores on v7x) instead of one block.
        return _forward_impl(t, self.hurst_params, self.steps_r, self.W_pad,
                             self.V_slab, batch=self.batch_size)


if __name__ == "__main__":
    key = jax.random.PRNGKey(0)
    k_model, k_eps = jax.random.split(key, 2)

    model = SparseGPNoisePallas(k_model)
    model.precompute(k_eps, batch_size=4)

    t = jnp.linspace(0.1, 0.9, 8, dtype=jnp.float32)   # T = 8 query times
    mean, std = model.forward(t)
    jax.block_until_ready((mean, std))

    assert mean.shape == (8 * 4, DIM), mean.shape       # mean.view(-1, dim)
    assert std.shape == (8 * 8, DIM), std.shape         # var.view(-1, dim).sqrt() * sqrt(dt)
    assert bool(jnp.all(jnp.isfinite(mean))) and bool(jnp.all(jnp.isfinite(std)))
    assert bool(jnp.all(std >= 0.0))
    print("KERNEL_OK")
</pallas_src>

<mosaic_0001>
module attributes {stable_mosaic.version = 11 : i64} {
  func.func @_increment_weight_kernel(%arg0: i32, %arg1: memref<16x5xf32, #tpu.memory_space<vmem>>, %arg2: memref<2x128xf32, #tpu.memory_space<vmem>>, %arg3: memref<16x128xf32, #tpu.memory_space<vmem>>) attributes {dimension_semantics = [#tpu.dimension_semantics<arbitrary>], iteration_bounds = array<i64: 1>, scalar_prefetch = 0 : i64, scratch_operands = 0 : i64, tpu.core_type = #tpu.core_type<tc>, window_params = [{pipeline_mode = #tpu.pipeline_mode<synchronous>, transform_indices = @transform_0, window_bounds = array<i64: 16, 5>}, {pipeline_mode = #tpu.pipeline_mode<synchronous>, transform_indices = @transform_1, window_bounds = array<i64: 2, 128>}, {pipeline_mode = #tpu.pipeline_mode<synchronous>, transform_indices = @transform_2, window_bounds = array<i64: 16, 128>}]} {
    %c0 = arith.constant 0 : index
    %c0_0 = arith.constant 0 : index
    %0 = vector.load %arg1[%c0, %c0_0] : memref<16x5xf32, #tpu.memory_space<vmem>>, vector<16x5xf32>
    %c0_1 = arith.constant 0 : index
    %c0_2 = arith.constant 0 : index
    %1 = vector.load %arg2[%c0_1, %c0_2] : memref<2x128xf32, #tpu.memory_space<vmem>>, vector<2x128xf32>
    %2 = tpu.iota {dimensions = array<i32: 1>} : vector<1x128xi32>
    %c100_i32 = arith.constant 100 : i32
    %3 = vector.broadcast %c100_i32 : i32 to vector<1x128xi32>
    %4 = arith.cmpi slt, %2, %3 : vector<1x128xi32>
    %5 = vector.extract_strided_slice %0 {offsets = [0, 0], sizes = [16, 1], strides = [1, 1]} : vector<16x5xf32> to vector<16x1xf32>
    %6 = vector.extract_strided_slice %0 {offsets = [0, 1], sizes = [16, 1], strides = [1, 1]} : vector<16x5xf32> to vector<16x1xf32>
    %7 = vector.extract_strided_slice %0 {offsets = [0, 2], sizes = [16, 1], strides = [1, 1]} : vector<16x5xf32> to vector<16x1xf32>
    %8 = vector.extract_strided_slice %0 {offsets = [0, 3], sizes = [16, 1], strides = [1, 1]} : vector<16x5xf32> to vector<16x1xf32>
    %9 = vector.extract_strided_slice %0 {offsets = [0, 4], sizes = [16, 1], strides = [1, 1]} : vector<16x5xf32> to vector<16x1xf32>
    %10 = vector.extract_strided_slice %1 {offsets = [0, 0], sizes = [1, 128], strides = [1, 1]} : vector<2x128xf32> to vector<1x128xf32>
    %11 = vector.extract_strided_slice %1 {offsets = [1, 0], sizes = [1, 128], strides = [1, 1]} : vector<2x128xf32> to vector<1x128xf32>
    %12 = vector.broadcast %5 : vector<16x1xf32> to vector<16x128xf32>
    %13 = vector.broadcast %10 : vector<1x128xf32> to vector<16x128xf32>
    %14 = arith.subf %12, %13 : vector<16x128xf32>
    %cst = arith.constant 0.000000e+00 : f32
    %15 = vector.broadcast %cst : f32 to vector<16x128xf32>
    %16 = arith.maximumf %14, %15 : vector<16x128xf32>
    %17 = vector.broadcast %5 : vector<16x1xf32> to vector<16x128xf32>
    %18 = vector.broadcast %11 : vector<1x128xf32> to vector<16x128xf32>
    %19 = arith.subf %17, %18 : vector<16x128xf32>
    %cst_3 = arith.constant 0.000000e+00 : f32
    %20 = vector.broadcast %cst_3 : f32 to vector<16x128xf32>
    %21 = arith.maximumf %19, %20 : vector<16x128xf32>
    %cst_4 = arith.constant 0.000000e+00 : f32
    %22 = vector.broadcast %cst_4 : f32 to vector<16x128xf32>
    %23 = arith.cmpf ogt, %16, %22 : vector<16x128xf32>
    %cst_5 = arith.constant 1.000000e-30 : f32
    %24 = vector.broadcast %cst_5 : f32 to vector<16x128xf32>
    %25 = arith.maximumf %16, %24 : vector<16x128xf32>
    %26 = math.log %25 : vector<16x128xf32>
    %27 = vector.broadcast %6 : vector<16x1xf32> to vector<16x128xf32>
    %28 = arith.mulf %27, %26 : vector<16x128xf32>
    %29 = math.exp %28 : vector<16x128xf32>
    %cst_6 = arith.constant 0.000000e+00 : f32
    %30 = vector.broadcast %cst_6 : f32 to vector<16x128xf32>
    %31 = arith.select %23, %29, %30 : vector<16x128xi1>, vector<16x128xf32>
    %cst_7 = arith.constant 0.000000e+00 : f32
    %32 = vector.broadcast %cst_7 : f32 to vector<16x128xf32>
    %33 = arith.cmpf ogt, %21, %32 : vector<16x128xf32>
    %cst_8 = arith.constant 1.000000e-30 : f32
    %34 = vector.broadcast %cst_8 : f32 to vector<16x128xf32>
    %35 = arith.maximumf %21, %34 : vector<16x128xf32>
    %36 = math.log %35 : vector<16x128xf32>
    %37 = vector.broadcast %6 : vector<16x1xf32> to vector<16x128xf32>
    %38 = arith.mulf %37, %36 : vector<16x128xf32>
    %39 = math.exp %38 : vector<16x128xf32>
    %cst_9 = arith.constant 0.000000e+00 : f32
    %40 = vector.broadcast %cst_9 : f32 to vector<16x128xf32>
    %41 = arith.select %33, %39, %40 : vector<16x128xi1>, vector<16x128xf32>
    %42 = arith.subf %31, %41 : vector<16x128xf32>
    %cst_10 = arith.constant 9.99999996E-13 : f32
    %43 = vector.broadcast %cst_10 : f32 to vector<16x128xf32>
    %44 = arith.addf %42, %43 : vector<16x128xf32>
    %45 = math.sqrt %44 : vector<16x128xf32>
    %46 = vector.broadcast %7 : vector<16x1xf32> to vector<16x128xf32>
    %47 = arith.mulf %45, %46 : vector<16x128xf32>
    %cst_11 = arith.constant 0.00999999977 : f32
    %48 = vector.broadcast %cst_11 : f32 to vector<16x1xf32>
    %49 = arith.addf %5, %48 : vector<16x1xf32>
    %50 = vector.broadcast %49 : vector<16x1xf32> to vector<16x128xf32>
    %51 = vector.broadcast %10 : vector<1x128xf32> to vector<16x128xf32>
    %52 = arith.subf %50, %51 : vector<16x128xf32>
    %cst_12 = arith.constant 0.000000e+00 : f32
    %53 = vector.broadcast %cst_12 : f32 to vector<16x128xf32>
    %54 = arith.maximumf %52, %53 : vector<16x128xf32>
    %55 = vector.broadcast %49 : vector<16x1xf32> to vector<16x128xf32>
    %56 = vector.broadcast %11 : vector<1x128xf32> to vector<16x128xf32>
    %57 = arith.subf %55, %56 : vector<16x128xf32>
    %cst_13 = arith.constant 0.000000e+00 : f32
    %58 = vector.broadcast %cst_13 : f32 to vector<16x128xf32>
    %59 = arith.maximumf %57, %58 : vector<16x128xf32>
    %cst_14 = arith.constant 0.000000e+00 : f32
    %60 = vector.broadcast %cst_14 : f32 to vector<16x128xf32>
    %61 = arith.cmpf ogt, %54, %60 : vector<16x128xf32>
    %cst_15 = arith.constant 1.000000e-30 : f32
    %62 = vector.broadcast %cst_15 : f32 to vector<16x128xf32>
    %63 = arith.maximumf %54, %62 : vector<16x128xf32>
    %64 = math.log %63 : vector<16x128xf32>
    %65 = vector.broadcast %8 : vector<16x1xf32> to vector<16x128xf32>
    %66 = arith.mulf %65, %64 : vector<16x128xf32>
    %67 = math.exp %66 : vector<16x128xf32>
    %cst_16 = arith.constant 0.000000e+00 : f32
    %68 = vector.broadcast %cst_16 : f32 to vector<16x128xf32>
    %69 = arith.select %61, %67, %68 : vector<16x128xi1>, vector<16x128xf32>
    %cst_17 = arith.constant 0.000000e+00 : f32
    %70 = vector.broadcast %cst_17 : f32 to vector<16x128xf32>
    %71 = arith.cmpf ogt, %59, %70 : vector<16x128xf32>
    %cst_18 = arith.constant 1.000000e-30 : f32
    %72 = vector.broadcast %cst_18 : f32 to vector<16x128xf32>
    %73 = arith.maximumf %59, %72 : vector<16x128xf32>
    %74 = math.log %73 : vector<16x128xf32>
    %75 = vector.broadcast %8 : vector<16x1xf32> to vector<16x128xf32>
    %76 = arith.mulf %75, %74 : vector<16x128xf32>
    %77 = math.exp %76 : vector<16x128xf32>
    %cst_19 = arith.constant 0.000000e+00 : f32
    %78 = vector.broadcast %cst_19 : f32 to vector<16x128xf32>
    %79 = arith.select %71, %77, %78 : vector<16x128xi1>, vector<16x128xf32>
    %80 = arith.subf %69, %79 : vector<16x128xf32>
    %cst_20 = arith.constant 9.99999996E-13 : f32
    %81 = vector.broadcast %cst_20 : f32 to vector<16x128xf32>
    %82 = arith.addf %80, %81 : vector<16x128xf32>
    %83 = math.sqrt %82 : vector<16x128xf32>
    %84 = vector.broadcast %9 : vector<16x1xf32> to vector<16x128xf32>
    %85 = arith.mulf %83, %84 : vector<16x128xf32>
    %86 = arith.subf %85, %47 : vector<16x128xf32>
    %cst_21 = arith.constant 1.000000e+01 : f32
    %87 = vector.broadcast %cst_21 : f32 to vector<16x128xf32>
    %88 = arith.mulf %86, %87 : vector<16x128xf32>
    %cst_22 = arith.constant 0.000000e+00 : f32
    %89 = vector.broadcast %cst_22 : f32 to vector<16x128xf32>
    %90 = arith.maximumf %88, %89 : vector<16x128xf32>
    %cst_23 = arith.constant 0.000000e+00 : f32
    %91 = vector.shape_cast %4 : vector<1x128xi1> to vector<1x128xi1>
    %92 = vector.broadcast %91 : vector<1x128xi1> to vector<16x128xi1>
    %93 = vector.broadcast %cst_23 : f32 to vector<16x128xf32>
    %94 = arith.select %92, %90, %93 : vector<16x128xi1>, vector<16x128xf32>
    %c0_24 = arith.constant 0 : index
    %c0_25 = arith.constant 0 : index
    %95 = vector.load %arg3[%c0_24, %c0_25] : memref<16x128xf32, #tpu.memory_space<vmem>>, vector<16x128xf32>
    tpu.vector_store %arg3[%c0_24, %c0_25], %94 {strides = array<i32>} : memref<16x128xf32, #tpu.memory_space<vmem>>, vector<16x128xf32>,
    return
  }
  func.func @transform_0(%arg0: i32) -> (i32, i32) {
    %c0_i32 = arith.constant 0 : i32
    %c0_i32_0 = arith.constant 0 : i32
    %c0_i32_1 = arith.constant 0 : i32
    return %c0_i32, %c0_i32_0 : i32, i32
  }
  func.func @transform_1(%arg0: i32) -> (i32, i32) {
    %c0_i32 = arith.constant 0 : i32
    %c0_i32_0 = arith.constant 0 : i32
    %c0_i32_1 = arith.constant 0 : i32
    return %c0_i32, %c0_i32_0 : i32, i32
  }
  func.func @transform_2(%arg0: i32) -> (i32, i32) {
    %c0_i32 = arith.constant 0 : i32
    %c0_i32_0 = arith.constant 0 : i32
    %c0_i32_1 = arith.constant 0 : i32
    return %c0_i32, %c0_i32_0 : i32, i32
  }
}

</mosaic_0001>

<bundles_post_ra>
// kernel: tpu_custom_call.1
= control target key start
LH: loop header
LB: loop body
LE: loop exit
PB: predicated region body
PF: predicated region fallthrough
CT: control target
= control target key end

     0   :  { %v327_v1 = vmov 0   ;;  %v328_v3 = vmov 1   ;;  %s396_s0 = inlined_call_operand.vmem [shape: f32[16,5], index: 0, kind: input, shape index: {}]   ;;  %s397_s1 = inlined_call_operand.vmem [shape: f32[2,128], index: 1, kind: input, shape index: {}]   ;;  %s398_s2 = inlined_call_operand.hbm [shape: f32[16,128], index: 2, kind: output, shape index: {}]  }
   0x1   :  { %v12_v0 = vld [vmem:[%s396_s0] sm:$0xff]  ;;  %252 = vset.pattern.permute.xlu0 %v327_v1  ;;  %253 = vset.pattern.permute.xlu1 %v327_v1 }
   0x2   :  { %v116_v2 = vadd.f32 0.01, %v12_v0  ;;  %20 = vperm.xlu0 %252, %v12_v0   ;;  %254 = vset.pattern.permute.xlu2 %v328_v3 }
   0x3   :  { %7 = vsyncpa [#allocation3], 0  ;;  %47 = vperm.xlu2 %254, %v12_v0   ;;  %v13_v4 = vld [vmem:[%s396_s0 + $0x8] sm:$0xff]  ;;  %v329_v6 = vmov 3   ;;  %v330_v7 = vmov 2   ;;  %v331_v8 = vmov 4  }
   0x4   :  { %120 = vperm.xlu1 %253, %v116_v2   ;;  %v117_v5 = vadd.f32 0.01, %v13_v4  ;;  %v14_v9 = vld [vmem:[%s397_s1] sm:$0x3]  ;;  %s332_s1 = smov [#allocation2]   ;;  %s232_s17 = sshll.u32 %s398_s2, 4  ;;  %s233_s17 = int_to_ptr.hbm [resolvable:$true] %s232_s17 }
   0x5   :  { %v28_v10 = vperm.slane %v14_v9, 0  ;;  %v33_v11 = vperm.slane %v14_v9, 1  ;;  %s230_s14 = sshll.u32 %s332_s1, 4  ;;  %s333_s18 = smov 128   ;;  %s231_s14 = int_to_ptr.vmem [resolvable:$true] %s230_s14 }
   0x6   :  { %s334_s19 = smov 8  }
   0xa   :  { %25 = vperm.xlu0 %252, %v13_v4  }
   0xb   :  { %51 = vperm.xlu2 %254, %v13_v4  }
   0xc   :  { %125 = vperm.xlu1 %253, %v117_v5  }
  0x12   :  { %255 = vset.pattern.permute.xlu0 %v329_v6 }
  0x13   :  { %145 = vperm.xlu0 %255, %v12_v0   ;;  %257 = vset.pattern.permute.xlu2 %v330_v7 }
  0x14   :  { %256 = vset.pattern.permute.xlu1 %v329_v6  ;;  %107 = vperm.xlu2 %257, %v12_v0  }
  0x15   :  { %149 = vperm.xlu1 %256, %v13_v4  }
  0x1b   :  { %260 = vset.pattern.permute.xlu0 %v331_v8 }
  0x1c   :  { %209 = vperm.xlu0 %260, %v13_v4   ;;  %259 = vset.pattern.permute.xlu2 %v331_v8 }
  0x1d   :  { %258 = vset.pattern.permute.xlu1 %v330_v7  ;;  %205 = vperm.xlu2 %259, %v12_v0  }
  0x1e   :  { %111 = vperm.xlu1 %258, %v13_v4  }
  0x5d   :  { %v48_v37 = vpop.permute.xlu2 %47 }
  0x65   :  { %v52_v62 = vpop.permute.xlu2 %51 }
  0x74   :  { %v21_v12 = vpop.permute.xlu0 %20 }
  0x75   :  { %v29_v13 = vsub.f32 %v21_v12, %v28_v10  ;;  %v34_v14 = vsub.f32 %v21_v12, %v33_v11 }
  0x76   :  { %v121_v15 = vpop.permute.xlu1 %120 }
  0x77   :  { %v128_v16 = vsub.f32 %v121_v15, %v28_v10  ;;  %v132_v17 = vsub.f32 %v121_v15, %v33_v11  ;;  %v359_v18 = vmax.f32 %v29_v13, 0.0  ;;  %v361_v19 = vmax.f32 %v34_v14, 0.0 }
  0x79   :  { %v363_v20 = vmax.f32 %v128_v16, 0.0  ;;  %v365_v21 = vmax.f32 %v132_v17, 0.0  ;;  %v40_v22 = vmax.f32 %v359_v18, 1e-30  ;;  %v64_v23 = vmax.f32 %v361_v19, 1e-30 }
  0x7a   :  { %vm38_vm0 = vcmp.gt.f32.partialorder %v359_v18, 0.0  ;;  %vm62_vm1 = vcmp.gt.f32.partialorder %v361_v19, 0.0 }
  0x7b   :  { %v138_v24 = vmax.f32 %v363_v20, 1e-30  ;;  %v162_v25 = vmax.f32 %v365_v21, 1e-30  ;;  %261 = vlog2.f32 %v40_v22  ;;  %vm136_vm2 = vcmp.gt.f32.partialorder %v363_v20, 0.0 }
  0x7c   :  { %263 = vlog2.f32 %v64_v23  ;;  %v26_v26 = vpop.permute.xlu0 %25  ;;  %vm160_vm3 = vcmp.gt.f32.partialorder %v365_v21, 0.0 }
  0x7d   :  { %265 = vlog2.f32 %v138_v24  ;;  %v30_v27 = vsub.f32 %v26_v26, %v28_v10  ;;  %v35_v28 = vsub.f32 %v26_v26, %v33_v11 }
  0x7e   :  { %v126_v29 = vpop.permute.xlu1 %125  ;;  %267 = vlog2.f32 %v162_v25 }
  0x7f   :  { %v129_v30 = vsub.f32 %v126_v29, %v28_v10  ;;  %v133_v31 = vsub.f32 %v126_v29, %v33_v11  ;;  %v371_v32 = vmax.f32 %v30_v27, 0.0  ;;  %v373_v33 = vmax.f32 %v35_v28, 0.0 }
  0x81   :  { %v375_v34 = vmax.f32 %v129_v30, 0.0  ;;  %v377_v35 = vmax.f32 %v133_v31, 0.0  ;;  %v262_v36 = vpop.eup %261  ;;  %v41_v38 = vmax.f32 %v371_v32, 1e-30  ;;  %v65_v39 = vmax.f32 %v373_v33, 1e-30 }
  0x82   :  { %v264_v40 = vpop.eup %263  ;;  %v43_v41 = vmul.f32 0.6931472, %v262_v36  ;;  %vm39_vm4 = vcmp.gt.f32.partialorder %v371_v32, 0.0  ;;  %vm63_vm5 = vcmp.gt.f32.partialorder %v373_v33, 0.0 }
  0x83   :  { %v139_v42 = vmax.f32 %v375_v34, 1e-30  ;;  %v266_v43 = vpop.eup %265  ;;  %v67_v44 = vmul.f32 0.6931472, %v264_v40  ;;  %269 = vlog2.f32 %v41_v38  ;;  %v163_v45 = vmax.f32 %v377_v35, 1e-30 }
  0x84   :  { %v268_v46 = vpop.eup %267  ;;  %v54_v47 = vmul.f32 %v48_v37, %v43_v41  ;;  %271 = vlog2.f32 %v65_v39  ;;  %v141_v48 = vmul.f32 0.6931472, %v266_v43  ;;  %vm137_vm6 = vcmp.gt.f32.partialorder %v375_v34, 0.0  ;;  %v108_v43 = vpop.permute.xlu2 %107 }
  0x85   :  { %v70_v49 = vmul.f32 %v67_v44, %v48_v37  ;;  %273 = vlog2.f32 %v139_v42  ;;  %v146_v50 = vpop.permute.xlu0 %145  ;;  %v165_v51 = vmul.f32 0.6931472, %v268_v46  ;;  %vm161_vm7 = vcmp.gt.f32.partialorder %v377_v35, 0.0 }
  0x86   :  { %v56_v52 = vmul.f32 1.442695, %v54_v47  ;;  %275 = vlog2.f32 %v163_v45  ;;  %v152_v53 = vmul.f32 %v146_v50, %v141_v48 }
  0x87   :  { %v72_v54 = vmul.f32 1.442695, %v70_v49  ;;  %v168_v55 = vmul.f32 %v165_v51, %v146_v50  ;;  %v150_v0 = vpop.permute.xlu1 %149 }
  0x88   :  { %277 = vpow2.f32 %v56_v52  ;;  %v154_v56 = vmul.f32 1.442695, %v152_v53 }
  0x89   :  { %v270_v57 = vpop.eup %269  ;;  %279 = vpow2.f32 %v72_v54  ;;  %v170_v58 = vmul.f32 1.442695, %v168_v55 }
  0x8a   :  { %v272_v59 = vpop.eup %271  ;;  %v45_v60 = vmul.f32 0.6931472, %v270_v57  ;;  %281 = vpow2.f32 %v154_v56 }
  0x8b   :  { %v274_v61 = vpop.eup %273  ;;  %v69_v63 = vmul.f32 0.6931472, %v272_v59  ;;  %283 = vpow2.f32 %v170_v58 }
  0x8c   :  { %v276_v1 = vpop.eup %275  ;;  %v55_v2 = vmul.f32 %v52_v62, %v45_v60  ;;  %v143_v3 = vmul.f32 0.6931472, %v274_v61  ;;  %v15_v61 = vlaneseq }
  0x8d   :  { %v71_v4 = vmul.f32 %v69_v63, %v52_v62  ;;  %v167_v5 = vmul.f32 0.6931472, %v276_v1  ;;  %v206_v62 = vpop.permute.xlu2 %205 }
  0x8e   :  { %v278_v6 = vpop.eup %277  ;;  %v58_v7 = vmul.f32 1.442695, %v55_v2  ;;  %v153_v8 = vmul.f32 %v150_v0, %v143_v3 }
  0x8f   :  { %v280_v9 = vpop.eup %279  ;;  %v60_v10 = vsel %vm38_vm0, %v278_v6, 0.0  ;;  %v74_v11 = vmul.f32 1.442695, %v71_v4  ;;  %v169_v12 = vmul.f32 %v167_v5, %v150_v0 }
  0x90   :  { %v282_v13 = vpop.eup %281  ;;  %v76_v14 = vsel %vm62_vm1, %v280_v9, 0.0  ;;  %285 = vpow2.f32 %v58_v7  ;;  %v156_v15 = vmul.f32 1.442695, %v153_v8  ;;  %v16_v8 = vand.u32 127, %v15_v61 }
  0x91   :  { %v284_v16 = vpop.eup %283  ;;  %v78_v17 = vsub.f32 %v60_v10, %v76_v14  ;;  %287 = vpow2.f32 %v74_v11  ;;  %v158_v18 = vsel %vm136_vm2, %v282_v13, 0.0  ;;  %v172_v22 = vmul.f32 1.442695, %v169_v12  ;;  %v112_v13 = vpop.permute.xlu1 %111 }
  0x92   :  { %v174_v19 = vsel %vm160_vm3, %v284_v16, 0.0  ;;  %289 = vpow2.f32 %v156_v15  ;;  %vm17_vm14 = vcmp.lt.s32.totalorder %v16_v8, 100 }
  0x93   :  { %v80_v23 = vadd.f32 1e-12, %v78_v17  ;;  %v176_v24 = vsub.f32 %v158_v18, %v174_v19  ;;  %291 = vpow2.f32 %v172_v22  ;;  %v210_v18 = vpop.permute.xlu0 %209 }
  0x95   :  { %v178_v20 = vadd.f32 1e-12, %v176_v24  ;;  %293 = vrsqrt.f32 %v80_v23  ;;  %vm89_vm8 = vcmp.eq.f32.partialorder %v80_v23, inf  ;;  %vm91_vm9 = vcmp.eq.f32.partialorder %v80_v23, 0.0 }
  0x96   :  { %v286_v25 = vpop.eup %285  ;;  %v92_v55 = vand.u32 2147483648, %v80_v23 }
  0x97   :  { %v288_v26 = vpop.eup %287  ;;  %v61_v21 = vsel %vm39_vm4, %v286_v25, 0.0  ;;  %295 = vrsqrt.f32 %v178_v20  ;;  %vm187_vm10 = vcmp.eq.f32.partialorder %v178_v20, inf  ;;  %v190_v63 = vand.u32 2147483648, %v178_v20 }
  0x98   :  { %v290_v27 = vpop.eup %289  ;;  %v77_v28 = vsel %vm63_vm5, %v288_v26, 0.0  ;;  %vm189_vm11 = vcmp.eq.f32.partialorder %v178_v20, 0.0 }
  0x99   :  { %v292_v29 = vpop.eup %291  ;;  %v79_v30 = vsub.f32 %v61_v21, %v77_v28  ;;  %v159_v31 = vsel %vm137_vm6, %v290_v27, 0.0 }
  0x9a   :  { %v175_v36 = vsel %vm161_vm7, %v292_v29, 0.0 }
  0x9b   :  { %v294_v37 = vpop.eup %293  ;;  %v81_v38 = vadd.f32 1e-12, %v79_v30  ;;  %v177_v39 = vsub.f32 %v159_v31, %v175_v36 }
  0x9c   :  { %v83_v40 = vmul.f32 %v294_v37, %v80_v23 }
  0x9d   :  { %v296_v32 = vpop.eup %295  ;;  %v179_v41 = vadd.f32 1e-12, %v177_v39  ;;  %297 = vrsqrt.f32 %v81_v38  ;;  %vm101_vm12 = vcmp.eq.f32.partialorder %v81_v38, inf  ;;  %v104_v12 = vand.u32 2147483648, %v81_v38 }
  0x9e   :  { %v84_v33 = vmul.f32 %v294_v37, %v83_v40  ;;  %v181_v42 = vmul.f32 %v296_v32, %v178_v20  ;;  %vm103_vm13 = vcmp.eq.f32.partialorder %v81_v38, 0.0 }
  0x9f   :  { %299 = vrsqrt.f32 %v179_v41  ;;  %vm199_vm15 = vcmp.eq.f32.partialorder %v179_v41, inf  ;;  %v202_v22 = vand.u32 2147483648, %v179_v41  ;;  %vm201_vm0 = vcmp.eq.f32.partialorder %v179_v41, 0.0 }
  0xa0   :  { %v85_v44 = vmul.f32 0.5, %v84_v33  ;;  %v182_v34 = vmul.f32 %v296_v32, %v181_v42 }
  0xa2   :  { %v86_v45 = vsub.f32 1.5, %v85_v44  ;;  %v183_v46 = vmul.f32 0.5, %v182_v34 }
  0xa3   :  { %v298_v47 = vpop.eup %297 }
  0xa4   :  { %v87_v35 = vmul.f32 %v294_v37, %v86_v45  ;;  %v184_v48 = vsub.f32 1.5, %v183_v46  ;;  %v95_v49 = vmul.f32 %v298_v47, %v81_v38 }
  0xa5   :  { %v300_v50 = vpop.eup %299 }
  0xa6   :  { %v88_v51 = vmul.f32 %v87_v35, %v80_v23  ;;  %v185_v52 = vmul.f32 %v296_v32, %v184_v48  ;;  %v96_v53 = vmul.f32 %v298_v47, %v95_v49  ;;  %v193_v54 = vmul.f32 %v300_v50, %v179_v41 }
  0xa8   :  { %v90_v56 = vsel %vm89_vm8, %v80_v23, %v88_v51  ;;  %v186_v57 = vmul.f32 %v185_v52, %v178_v20  ;;  %v97_v58 = vmul.f32 0.5, %v96_v53  ;;  %v194_v59 = vmul.f32 %v300_v50, %v193_v54 }
  0xa9   :  { %v93_v60 = vsel %vm91_vm9, %v92_v55, %v90_v56 }
  0xaa   :  { %v188_v0 = vsel %vm187_vm10, %v178_v20, %v186_v57  ;;  %v98_v1 = vsub.f32 1.5, %v97_v58  ;;  %v195_v2 = vmul.f32 0.5, %v194_v59  ;;  %v114_v4 = vmul.f32 %v108_v43, %v93_v60 }
  0xab   :  { %v191_v3 = vsel %vm189_vm11, %v190_v63, %v188_v0 }
  0xac   :  { %v212_v5 = vmul.f32 %v206_v62, %v191_v3  ;;  %v99_v6 = vmul.f32 %v298_v47, %v98_v1  ;;  %v196_v7 = vsub.f32 1.5, %v195_v2 }
  0xae   :  { %v214_v9 = vsub.f32 %v212_v5, %v114_v4  ;;  %v100_v10 = vmul.f32 %v99_v6, %v81_v38  ;;  %v197_v11 = vmul.f32 %v300_v50, %v196_v7 }
  0xb0   :  { %v216_v14 = vmul.f32 10.0, %v214_v9  ;;  %v102_v15 = vsel %vm101_vm12, %v81_v38, %v100_v10  ;;  %v198_v16 = vmul.f32 %v197_v11, %v179_v41 }
  0xb1   :  { %v105_v17 = vsel %vm103_vm13, %v104_v12, %v102_v15 }
  0xb2   :  { %v218_v19 = vmax.f32 %v216_v14, 0.0  ;;  %v115_v23 = vmul.f32 %v112_v13, %v105_v17  ;;  %v200_v24 = vsel %vm199_vm15, %v179_v41, %v198_v16 }
  0xb3   :  { %v203_v20 = vsel %vm201_vm0, %v202_v22, %v200_v24 }
  0xb4   :  { %v222_v25 = vsel %vm17_vm14, %v218_v19, 0.0  ;;  %v213_v26 = vmul.f32 %v210_v18, %v203_v20 }
  0xb5   :  { %224 = vst [vmem:[#allocation2] sm:$0xff] %v222_v25 }
  0xb6   :  { %v215_v21 = vsub.f32 %v213_v26, %v115_v23 }
  0xb8   :  { %v217_v27 = vmul.f32 10.0, %v215_v21 }
  0xba   :  { %v219_v28 = vmax.f32 %v217_v27, 0.0 }
  0xbc   :  { %v223_v29 = vsel %vm17_vm14, %v219_v28, 0.0 }
  0xbd   :  { %225 = vst [vmem:[#allocation2 + $0x8] sm:$0xff] %v223_v29 }
  0xbe   :  { %238 = dma.vmem_to_hbm [thread:$0]  %s231_s14, 256, %s233_s17, [#allocation3], %s333_s18, %s333_s18, %s334_s19  }
  0xbf   :  { %325 = dma.done.wait [#allocation3], 256  }
  0xc0   :  { %326 = vsyncadd [#allocation3], 4294967040 }
  0xc1   :  { %243 = vsyncpa [#allocation3], 1 }

</bundles_post_ra>
